<compile_context>
chip_gen: v7x
topology: tpu7x:2x2x1
jax: 0.10.0
libtpu: 0.0.40
codegen_flags: <defaults>
</compile_context>

<pallas_src>
import numpy as np
import jax
import jax.numpy as jnp
from jax.experimental import pallas as pl
from jax.experimental.pallas import tpu as pltpu

D_MODEL = 128          # d_model (lane-aligned)
MAX_SEQ = 8            # max_sequence_length
DROP_P = 0.1           # nn.Dropout(p=0.1), training-mode semantics
_DROP_THRESHOLD = np.uint32(round(DROP_P * (1 << 32)))   # keep iff bits >= threshold
_KEEP_SCALE = np.float32(1.0 / (1.0 - DROP_P))


def _sentence_embed_kernel(ids_ref, emb_ref, pe_ref, bits_ref, out_ref):
    # ids_ref : (S, 1)  int32   token ids for this batch element
    # emb_ref : (V, D)  f32     full embedding table (VMEM resident)
    # pe_ref  : (S, D)  f32     positional encoding   (VMEM resident)
    # bits_ref: (S, D)  uint32  pre-drawn dropout bits for this batch element
    # out_ref : (S, D)  f32
    S, D = out_ref.shape
    V = emb_ref.shape[0]

    # Embedding gather as one-hot x table on the MXU (bf16/f32-portable, no int MXU).
    ids = ids_ref[...]                                            # (S, 1) int32
    vocab_iota = jax.lax.broadcasted_iota(jnp.int32, (S, V), 1)   # (S, V)
    one_hot = (ids == vocab_iota).astype(jnp.float32)             # (S, V)
    emb = jnp.dot(one_hot, emb_ref[...],
                  preferred_element_type=jnp.float32)             # (S, D)

    val = emb + pe_ref[...]                                       # (S, D)

    # Dropout (p=0.1, training mode): keep iff bits >= p * 2^32  (bits uniform u32).
    # TODO(synk): bit stream differs from torch.nn.Dropout's RNG (same distribution);
    # eval-mode (identity) path not implemented.
    keep = bits_ref[...] >= _DROP_THRESHOLD
    out_ref[...] = jnp.where(keep, val * _KEEP_SCALE, jnp.float32(0.0))


def sentence_embedding_forward(token_ids, emb_table, pos_enc, key):
    """token_ids: (B, S) int32; emb_table: (V, D) f32; pos_enc: (S, D) f32; key: PRNG key."""
    B, S = token_ids.shape
    V, D = emb_table.shape
    ids_flat = token_ids.reshape(B * S, 1).astype(jnp.int32)
    # One random draw covers the whole (B*S, D) output (single stream, not 16 reseeds).
    drop_bits = jax.random.bits(key, (B * S, D), dtype=jnp.uint32)

    out_flat = pl.pallas_call(
        _sentence_embed_kernel,
        out_shape=jax.ShapeDtypeStruct((B * S, D), jnp.float32),
        grid=(B,),
        in_specs=[
            pl.BlockSpec((S, 1), lambda b: (b, 0)),        # ids rows for batch b
            pl.BlockSpec((V, D), lambda b: (0, 0)),        # full table, stays resident
            pl.BlockSpec((S, D), lambda b: (0, 0)),        # full pos_enc, stays resident
            pl.BlockSpec((S, D), lambda b: (b, 0)),        # dropout bits rows for b
        ],
        out_specs=pl.BlockSpec((S, D), lambda b: (b, 0)),  # (8,128) sublane-dense tile
        compiler_params=pltpu.CompilerParams(
            # "parallel": no cross-iteration state -> shard batch across v7x cores.
            # NOTE: if the vocab grows, raise vmem_limit_bytes (v5e scoped default is
            # 16 MiB) while V*D*4 fits; beyond ~40 MiB switch to batched manual-DMA
            # gather instead of a resident table (v7x VMEM is 64 MiB).
            dimension_semantics=("parallel",),
        ),
    )(ids_flat, emb_table, pos_enc, drop_bits)
    return out_flat.reshape(B, S, D)


def positional_encoding(max_seq, d_model):
    # Mirrors PositionalEncoding.forward (sin on even dims, cos on odd dims, interleaved).
    even_i = jnp.arange(0, d_model, 2, dtype=jnp.float32)
    denominator = jnp.power(10000.0, even_i / d_model)
    position = jnp.arange(max_seq, dtype=jnp.float32).reshape(max_seq, 1)
    even_pe = jnp.sin(position / denominator)
    odd_pe = jnp.cos(position / denominator)
    stacked = jnp.stack([even_pe, odd_pe], axis=2)
    return stacked.reshape(max_seq, d_model)


def batch_tokenize(batch, language_to_index, start_tok, end_tok, pad_tok,
                   max_seq, start_token, end_token):
    # Host-side string preprocessing (mirrors SentenceEmbedding.batch_tokenize).
    rows = []
    for sentence in batch:
        idx = [language_to_index[c] for c in list(sentence)]
        if start_token:
            idx.insert(0, language_to_index[start_tok])
        if end_token:
            idx.append(language_to_index[end_tok])
        while len(idx) < max_seq:
            idx.append(language_to_index[pad_tok])
        rows.append(idx)
    return jnp.asarray(np.array(rows, dtype=np.int32))


if __name__ == "__main__":
    START_TOKEN, END_TOKEN, PADDING_TOKEN = "<s>", "</s>", "<pad>"
    chars = "abcdefghijklmnopqrstuvwxyz "
    vocab = [PADDING_TOKEN, START_TOKEN, END_TOKEN] + list(chars)
    language_to_index = {tok: i for i, tok in enumerate(vocab)}
    vocab_size = len(language_to_index)          # 30

    # Deterministic parameter init (nn.Embedding default ~ N(0, 1)).
    key = jax.random.PRNGKey(0)
    emb_key, drop_key = jax.random.split(key)
    emb_table = jax.random.normal(emb_key, (vocab_size, D_MODEL), dtype=jnp.float32)

    batch = ["hello", "tpu"]                     # batch_size = 2
    token_ids = batch_tokenize(batch, language_to_index, START_TOKEN, END_TOKEN,
                               PADDING_TOKEN, MAX_SEQ,
                               start_token=True, end_token=True)   # (2, 8) int32
    pos_enc = positional_encoding(MAX_SEQ, D_MODEL)                # (8, 128) f32

    out = sentence_embedding_forward(token_ids, emb_table, pos_enc, drop_key)
    out = jax.block_until_ready(out)
    assert out.shape == (2, MAX_SEQ, D_MODEL) and out.dtype == jnp.float32
    assert bool(jnp.all(jnp.isfinite(out)))
    print("KERNEL_OK")
</pallas_src>

<mosaic_0001>
module attributes {stable_mosaic.version = 11 : i64} {
  func.func @_sentence_embed_kernel(%arg0: i32, %arg1: memref<8x1xi32, #tpu.memory_space<vmem>>, %arg2: memref<30x128xf32, #tpu.memory_space<vmem>>, %arg3: memref<8x128xf32, #tpu.memory_space<vmem>>, %arg4: memref<8x128xi32, #tpu.memory_space<vmem>>, %arg5: memref<8x128xf32, #tpu.memory_space<vmem>>) attributes {dimension_semantics = [#tpu.dimension_semantics<parallel>], iteration_bounds = array<i64: 2>, scalar_prefetch = 0 : i64, scratch_operands = 0 : i64, tpu.core_type = #tpu.core_type<tc>, window_params = [{transform_indices = @transform_0, window_bounds = array<i64: 8, 1>}, {pipeline_mode = #tpu.pipeline_mode<synchronous>, transform_indices = @transform_1, window_bounds = array<i64: 30, 128>}, {pipeline_mode = #tpu.pipeline_mode<synchronous>, transform_indices = @transform_2, window_bounds = array<i64: 8, 128>}, {transform_indices = @transform_3, window_bounds = array<i64: 8, 128>}, {transform_indices = @transform_4, window_bounds = array<i64: 8, 128>}]} {
    %c0 = arith.constant 0 : index
    %c0_0 = arith.constant 0 : index
    %0 = vector.load %arg1[%c0, %c0_0] : memref<8x1xi32, #tpu.memory_space<vmem>>, vector<8x1xi32>
    %1 = tpu.iota {dimensions = array<i32: 1>} : vector<8x30xi32>
    %2 = vector.broadcast %0 : vector<8x1xi32> to vector<8x30xi32>
    %3 = arith.cmpi eq, %2, %1 : vector<8x30xi32>
    %4 = arith.extui %3 : vector<8x30xi1> to vector<8x30xi32>
    %5 = arith.sitofp %4 : vector<8x30xi32> to vector<8x30xf32>
    %c0_1 = arith.constant 0 : index
    %c0_2 = arith.constant 0 : index
    %6 = vector.load %arg2[%c0_1, %c0_2] : memref<30x128xf32, #tpu.memory_space<vmem>>, vector<30x128xf32>
    %cst = arith.constant dense<0.000000e+00> : vector<8x128xf32>
    %7 = tpu.matmul %5, %6, %cst {dimension_numbers = #tpu.dot_dimension_numbers<[1], [0], [0], [1], [0, 0, 1, 1], [], []>} : vector<8x30xf32>, vector<30x128xf32>, vector<8x128xf32> -> vector<8x128xf32>
    %c0_3 = arith.constant 0 : index
    %c0_4 = arith.constant 0 : index
    %8 = vector.load %arg3[%c0_3, %c0_4] : memref<8x128xf32, #tpu.memory_space<vmem>>, vector<8x128xf32>
    %9 = arith.addf %7, %8 : vector<8x128xf32>
    %c0_5 = arith.constant 0 : index
    %c0_6 = arith.constant 0 : index
    %10 = vector.load %arg4[%c0_5, %c0_6] : memref<8x128xi32, #tpu.memory_space<vmem>>, vector<8x128xi32>
    %c429496730_i32 = arith.constant 429496730 : i32
    %11 = vector.broadcast %c429496730_i32 : i32 to vector<8x128xi32>
    %12 = arith.cmpi uge, %10, %11 : vector<8x128xi32>
    %cst_7 = arith.constant 1.11111116 : f32
    %13 = vector.broadcast %cst_7 : f32 to vector<8x128xf32>
    %14 = arith.mulf %9, %13 : vector<8x128xf32>
    %cst_8 = arith.constant 0.000000e+00 : f32
    %15 = vector.broadcast %cst_8 : f32 to vector<8x128xf32>
    %16 = arith.select %12, %14, %15 : vector<8x128xi1>, vector<8x128xf32>
    %c0_9 = arith.constant 0 : index
    %c0_10 = arith.constant 0 : index
    %17 = vector.load %arg5[%c0_9, %c0_10] : memref<8x128xf32, #tpu.memory_space<vmem>>, vector<8x128xf32>
    tpu.vector_store %arg5[%c0_9, %c0_10], %16 {strides = array<i32>} : memref<8x128xf32, #tpu.memory_space<vmem>>, vector<8x128xf32>,
    return
  }
  func.func @transform_0(%arg0: i32) -> (i32, i32) {
    %c0_i32 = arith.constant 0 : i32
    %c0_i32_0 = arith.constant 0 : i32
    return %arg0, %c0_i32 : i32, i32
  }
  func.func @transform_1(%arg0: i32) -> (i32, i32) {
    %c0_i32 = arith.constant 0 : i32
    %c0_i32_0 = arith.constant 0 : i32
    %c0_i32_1 = arith.constant 0 : i32
    return %c0_i32, %c0_i32_0 : i32, i32
  }
  func.func @transform_2(%arg0: i32) -> (i32, i32) {
    %c0_i32 = arith.constant 0 : i32
    %c0_i32_0 = arith.constant 0 : i32
    %c0_i32_1 = arith.constant 0 : i32
    return %c0_i32, %c0_i32_0 : i32, i32
  }
  func.func @transform_3(%arg0: i32) -> (i32, i32) {
    %c0_i32 = arith.constant 0 : i32
    %c0_i32_0 = arith.constant 0 : i32
    return %arg0, %c0_i32 : i32, i32
  }
  func.func @transform_4(%arg0: i32) -> (i32, i32) {
    %c0_i32 = arith.constant 0 : i32
    %c0_i32_0 = arith.constant 0 : i32
    return %arg0, %c0_i32 : i32, i32
  }
}

</mosaic_0001>

<bundles_post_ra>
// kernel: tpu_custom_call.1
= control target key start
LH: loop header
LB: loop body
LE: loop exit
PB: predicated region body
PF: predicated region fallthrough
CT: control target
= control target key end

     0   :  { %9 = vsyncpa [#allocation3], 0  ;;  %s790_s0 = inlined_call_operand.vmem [shape: s32[16,1], index: 0, kind: input, shape index: {}]   ;;  %s791_s1 = inlined_call_operand.hbm [shape: f32[30,128], index: 1, kind: input, shape index: {}]   ;;  %s792_s2 = inlined_call_operand.vmem [shape: f32[8,128], index: 2, kind: input, shape index: {}]   ;;  %s793_s3 = inlined_call_operand.vmem [shape: u32[16,128], index: 3, kind: input, shape index: {}]   ;;  %s794_s4 = inlined_call_operand.hbm [shape: f32[16,128], index: 4, kind: output, shape index: {}]  }
   0x1   :  { %10 = vsyncpa [#allocation4], 0 }
   0x2   :  { %12 = vsyncpa [#allocation4 + $0x1], 0  ;;  %s646_s15 = smov 0   ;;  %s648_s16 = smov 0  }
   0x3   :  { %s650_s17 = smov 0   ;;  %s652_s18 = smov 0  }
   0x4 LB: > { %s667_s19 = sadd.s32 4294967295, %s610_s18   ;;  %s419_s20 = sadd.s32 4294967294, %s610_s18   ;;  %s610_s18 = sphi %s652_s18, %s810_s18   ;;  %s606_s17 = sphi %s650_s17, %s809_s17   ;;  %s602_s16 = sphi %s648_s16, %s808_s16   ;;  %s598_s15 = sphi %s646_s15, %s807_s15  }
   0x5   : > { %s671_s21 = sadd.s32 1, %s610_s18   ;;  %s119_s22 = sadd.s32 1, %s606_s17 }
   0x6   : > { %s116_s23 = ssub.s32 %s610_s18, %s671_s21  ;;  %p129_p0 = scmp.ne.s32.totalorder %s606_s17, %s602_s16 }
   0x7   : > { %p117_p1 = scmp.eq.s32.totalorder %s116_s23, 0  ;;  %p130_p2 = scmp.eq.s32.totalorder %s667_s19, 1 }
   0x8   : > { %p135_p3 = scmp.ne.s32.totalorder %s602_s16, %s598_s15  ;;  %p136_p4 = scmp.eq.s32.totalorder %s419_s20, 1 }
   0x9   : > { %s682_s24 = scalar_select %p117_p1, %s606_s17, %s119_s22  }
   0xa   : > { %p684_p5 = por %p130_p2, %p129_p0  ;;  %p688_p6 = por %p136_p4, %p135_p3 }
   0xb   : > { %p420_p7 = scmp.ge.s32.totalorder %s610_s18, 1  ;;  %p143_p8 = scmp.lt.s32.totalorder %s610_s18, 3 }
   0xc   : > { %s798_s25 = scalar_select %p684_p5, 1, 0 }
   0xd   : > { %s799_s26 = scalar_select %p688_p6, 1, 0 }
   0xe   : > { %p795_p9 = scmp.eq.s32.totalorder %s667_s19, 0  ;;  %p695_p10 = pnand %p420_p7, %p143_p8 }
   0xf   : > { %s612_s28 = smov [#allocation2]   ;;  %s516_s7 = scalar_lea.hbm %s791_s1, 512 }
  0x10   : > { %s800_s27 = scalar_select %p695_p10, 1, 0 }
  0x11   : > { %s155_s29 = sshll.u32 %s612_s28, 4  ;;  %p464_p11 = pneg %p695_p10  ;;  %s156_s29 = int_to_ptr.vmem [resolvable:$true] %s155_s29 }
  0x12   : > { %p517_p13 = scmp.ne.s32.totalorder %s791_s1, %s516_s7  ;;  %p523_p3 = scmp.lt.u32.totalorder %s516_s7, %s791_s1 }
  0x13   : > { %p703_p12 = pnand %p795_p9, %p464_p11 }
  0x15   : > { %p518_p0 = pneg %p703_p12 }
  0x17   : > { %p519_p1 = pnand %p518_p0, %p517_p13 }
  0x19   : > { %p520_p2 = pneg %p519_p1 }
  0x1b   : > { %p525_p4 = pnand %p523_p3, %p520_p2 }
  0x1d   : > { %528 = shalt.err (!%p525_p4)
}
  0x1e   : > { %s529_s12 = scalar_lea.vmem %s156_s29, 512  ;;  %p537_p9 = scmp.lt.s32.totalorder %s156_s29, %s156_s29 }
  0x1f   : > { %p530_p7 = scmp.ne.s32.totalorder %s156_s29, %s529_s12  ;;  %p538_p6 = scmp.lt.s32.totalorder %s529_s12, %s529_s12 }
  0x21   : > { %p532_p8 = pnand %p530_p7, %p518_p0  ;;  %p539_p5 = por %p538_p6, %p537_p9 }
  0x23   : > { %p533_p11 = pneg %p532_p8 }
  0x25   : > { %p540_p10 = pnand %p539_p5, %p533_p11 }
  0x27   : > { %543 = shalt.err (!%p540_p10)
}
  0x28   : > { %s613_s13 = smov 128   ;;  %s614_s14 = smov 8  }
  0x29   : > { %467 = dma.hbm_to_vmem [thread:$0]  (!%p703_p12), %s791_s1, 512, %s156_s29, [#allocation3], %s613_s13, %s613_s13, %s614_s14  }
  0x2a   : > { %p802_p13 = scmp.ne.s32.totalorder %s800_s27, 0 }
  0x2b   : > { %p803_p1 = scmp.eq.s32.totalorder (!%p802_p13), %s667_s19, 0 }
  0x2c   : > { %188 = sbr.rel (%p802_p13) target bundleno = 420 (0x1a4), region = 36 }
  0x33   : > { %589 = dma.done.wait (%p803_p1), [#allocation3], 512   ;;  %p804_p0 = pmov %p803_p1 }
  0x34   : > { %p217_p5 = scmp.lt.s32.totalorder %s667_s19, 1  ;;  %v615_v0 = vmov 0   ;;  %v616_v1 = vmov 0.0|0.0   ;;  %v234_v3 = vld [vmem:[#allocation2] sm:$0xff]  ;;  %v235_v4 = vld [vmem:[#allocation2 + $0x8] sm:$0xff]  ;;  %vm243_vm0 = vcmask 1045504   ;;  %v226_v10 = vlaneseq }
  0x35   : > { %591 = vsyncadd (%p804_p0), [#allocation3], 4294966784  ;;  %515 = vset.pattern.permute.xlu0 %v615_v0  ;;  %451 = vmatprep.subr.bf16.mxu0 %v616_v1  ;;  %v452_v5 = vpack.c.bf16 %v235_v4, %v234_v3  ;;  %v236_v6 = vld [vmem:[#allocation2 + $0x10] sm:$0xff]  ;;  %v237_v7 = vld [vmem:[#allocation2 + $0x18] sm:$0x3f]  ;;  %vm617_vm1 = vmmov 0  }
  0x36   : > { %s731_s23 = scalar_select %p217_p5, %s667_s19, 1  ;;  %v618_v8 = vmov 0.0   ;;  %v455_v9 = vpack.c.bf16 %v237_v7, %v236_v6  ;;  %vm619_vm2 = vmmov 1   ;;  %v227_v11 = vand.u32 127, %v226_v10  ;;  %v238_v14 = vld [vmem:[%s792_s2] sm:$0xff] }
  0x37   : > { %448 = vmatprep.mubr.msk.f32.mxu0 %vm617_vm1, %v618_v8  ;;  %453 = vmatpush3.bf16.msra.mxu0 %v452_v5  ;;  %vm456_vm3 = vmpackc.low %vm243_vm0, %vm619_vm2  ;;  %vm239_vm4 = vcmask 244736   ;;  %s214_s5 = sand.u32 1, %s602_s16   ;;  %s432_s12 = sshll.u32 %s667_s19, 7 }
  0x38   : > { %s426_s28 = sshll.u32 %s731_s23, 3  ;;  %454 = vmatprep.subr.bf16.mxu0 %v616_v1  ;;  %s425_s6 = sshll.u32 %s214_s5, 3 }
  0x39   : > { %s220_s30 = scalar_lea.vmem %s790_s0, %s426_s28  ;;  %s224_s9 = scalar_lea.vmem %s793_s3, %s426_s28 }
  0x3a   : > { %v225_v2 = vld [vmem:[%s220_s30] sm:$0xff]  ;;  %s216_s13 = scalar_lea.vmem [#allocation5], %s425_s6  ;;  %s748_s23 = scalar_lea.hbm %s794_s4, %s432_s12 }
  0x3b   : > { %229 = vperm.xlu0 %515, %v225_v2   ;;  %457 = vmatpush3.bf16.msk.msra.mxu0 %vm456_vm3, %v455_v9  ;;  %v317_v15 = vld [vmem:[%s224_s9] sm:$0xff]  ;;  %s336_s14 = sshll.u32 %s216_s13, 4  ;;  %s323_s28 = scalar_lea.sflag [#allocation4], %s214_s5  ;;  %s750_s14 = int_to_ptr.vmem [resolvable:$true] %s336_s14 }
  0x3c   : > { %vm318_vm6 = vcmp.ge.u32.totalorder %v317_v15, 429496730  ;;  %s544_s29 = scalar_lea.vmem %s750_s14, 128  ;;  %p805_p9 = scmp.ne.s32.totalorder %s798_s25, 0 }
  0x3d   : > { %p545_p6 = scmp.ne.s32.totalorder %s750_s14, %s544_s29  ;;  %s620_s19 = smov [#allocation5]  }
  0x3e   : > { %s548_s27 = sshll.u32 %s620_s19, 4  ;;  %s549_s27 = int_to_ptr.vmem [resolvable:$false] %s548_s27 }
  0x3f   : > { %p546_p10 = pnand %p545_p6, %p805_p9  ;;  %s550_s30 = scalar_lea.vmem %s549_s27, 256 }
  0x40   : > { %p551_p2 = scmp.lt.s32.totalorder %s750_s14, %s549_s27  ;;  %p552_p3 = scmp.lt.s32.totalorder %s550_s30, %s544_s29 }
  0x41   : > { %p547_p12 = pneg %p546_p10 }
  0x42   : > { %p553_p4 = por %p552_p3, %p551_p2 }
  0x44   : > { %p554_p7 = pnand %p553_p4, %p547_p12 }
  0xba   : > { %v230_v12 = vpop.permute.xlu0 %229 }
  0xbb   : > { %vm231_vm5 = vcmp.eq.s32.totalorder %v230_v12, %v227_v11 }
  0xbc   : > { %v428_v13 = vsel %vm231_vm5, 1.0, %v618_v8 }
  0xbd   : > { %449 = vmatmul.mubr.msk.f32.vlgmr.msra.gmra.mrb[0].mxu0 %vm239_vm4, %v428_v13 }
 0x190   : > { %v313_v16 = vpop.f32.mrb[0].mxu0 }
 0x191   : > { %v314_v17 = vadd.f32 %v313_v16, %v238_v14  ;;  %v450_v18 = vpop.f32.mrb[1].mxu0 }
 0x193   : > { %v319_v19 = vmul.f32 1.1111112, %v314_v17 }
 0x195   : > { %v320_v20 = vsel %vm318_vm6, %v319_v19, 0.0 }
 0x196   : > { %321 = vst [vmem:[%s216_s13] sm:$0xff] %v320_v20 }
 0x197   : > { %557 = shalt.err (!%p554_p7)
}
 0x198   : > { %s558_s5 = scalar_lea.hbm %s748_s23, 128  ;;  %s562_s8 = scalar_lea.hbm %s794_s4, 256 }
 0x199   : > { %p559_p8 = scmp.ne.s32.totalorder %s748_s23, %s558_s5  ;;  %p563_p1 = scmp.lt.u32.totalorder %s748_s23, %s794_s4 }
 0x19a   : > { %p564_p0 = scmp.lt.u32.totalorder %s562_s8, %s558_s5  ;;  %p566_p6 = scmp.lt.u32.totalorder %s558_s5, %s748_s23 }
 0x19b   : > { %p560_p11 = pnand %p559_p8, %p805_p9 }
 0x19c   : > { %p565_p5 = por %p564_p0, %p563_p1 }
 0x19d   : > { %p561_p13 = pneg %p560_p11 }
 0x19e   : > { %p567_p10 = por %p566_p6, %p565_p5 }
 0x1a0   : > { %p568_p12 = pnand %p567_p10, %p561_p13 }
 0x1a2   : > { %571 = shalt.err (!%p568_p12)
}
 0x1a3   : > { %462 = dma.vmem_to_hbm [thread:$0]  (%p805_p9), %s750_s14, 128, %s748_s23, %s323_s28  }
 0x1a4 PF: > { %p474_p2 = scmp.ge.s32.totalorder %s610_s18, 2  ;;  %s348_s11 = sand.u32 1, %s598_s15  }
 0x1a5   : > { %p806_p3 = scmp.ne.s32.totalorder %s799_s26, 0  ;;  %s349_s12 = scalar_lea.sflag [#allocation4], %s348_s11 }
 0x1a7   : > { %p469_p4 = pnand %p474_p2, %p806_p3 }
 0x1a9   : > { %593 = dma.done.wait (!%p469_p4), %s349_s12, 128  }
 0x1aa   : > { %595 = vsyncadd (!%p469_p4), %s349_s12, 4294967168  ;;  %p15_p7 = scmp.ge.s32.totalorder %s671_s21, 4   ;;  %s807_s15 = smov %s602_s16 }
 0x1ab   : > { %s808_s16 = smov %s606_s17  ;;  %s809_s17 = smov %s682_s24 }
 0x1ac   : > { %s810_s18 = smov %s671_s21  ;;  %17 = sbr.rel (!%p15_p7) target bundleno = 4 (0x4), region = 79 }
 0x1b3   :  { %354 = vsyncpa [#allocation3], 1 }
 0x1b4   :  { %356 = vsyncpa [#allocation3 + $0x1], 1 }
 0x1b5   :  { %357 = vsyncpa [#allocation4], 1 }
 0x1b6   :  { %359 = vsyncpa [#allocation4 + $0x1], 1 }

</bundles_post_ra>
